<compile_context>
chip_gen: v7x
topology: tpu7x:2x2x1
jax: 0.10.0
libtpu: 0.0.40
codegen_flags: <defaults>
</compile_context>

<pallas_src>
import functools

import jax
import jax.numpy as jnp
from jax.experimental import pallas as pl
from jax.experimental.pallas import tpu as pltpu


def _round_up(x, m):
    return (x + m - 1) // m * m


def _zero_output_kernel(x_ref, p_ref, o_ref, *, f_dim, fp_rows):
    """y = tanh(x @ W1c + b1c) . w2c + b2c for one batch tile, fully in VMEM."""
    x = x_ref[...]                                  # (TB, F)   f32
    w1 = p_ref[0:f_dim, :]                          # (F, Hp)   fused [W1 | W1i]
    b1 = p_ref[fp_rows:fp_rows + 1, :]              # (1, Hp)   fused [b1 | b1i]
    w2 = p_ref[fp_rows + 8:fp_rows + 9, :]          # (1, Hp)   scaling*[W2 ; -W2i]^T
    b2 = p_ref[fp_rows + 16:fp_rows + 17, 0:1]      # (1, 1)    scaling*(b2 - b2i)

    # Single fused MXU pass (current + init nets share one matmul); tanh on EUP.
    h = jnp.tanh(jnp.dot(x, w1, preferred_element_type=jnp.float32) + b1)   # (TB, Hp)
    # OUT == 1: VPU multiply + XLU lane reduction instead of a 1-lane-wide matmul.
    y = jnp.sum(h * w2, axis=-1, keepdims=True) + b2                         # (TB, 1)
    o_ref[...] = y.astype(o_ref.dtype)


def _pack_params(params, init_params, scaling):
    """Fuse current+init params (scaling folded in) into one lane-dense buffer."""
    w1, b1, w2, b2 = params
    w1i, b1i, w2i, b2i = init_params
    f_dim, hidden = w1.shape
    out_dim = w2.shape[1]
    assert out_dim == 1, "ZeroOutput NTK head is scalar-output (Linear(H, 1))."

    h2 = 2 * hidden
    hp = _round_up(max(h2, 128), 128)   # lane-dense hidden width
    fp_rows = _round_up(f_dim, 8)       # keep sections 8-sublane aligned
    rows = fp_rows + 24                 # [W1c | b1c | w2c-row | b2c] sections

    w1c = jnp.concatenate([w1, w1i], axis=1)                # (F, 2H)
    b1c = jnp.concatenate([b1, b1i], axis=1)                # (1, 2H)
    w2c = scaling * jnp.concatenate([w2, -w2i], axis=0)     # (2H, 1)
    b2c = scaling * (b2 - b2i)                               # (1, 1)

    packed = jnp.zeros((rows, hp), jnp.float32)
    packed = packed.at[0:f_dim, 0:h2].set(w1c.astype(jnp.float32))
    packed = packed.at[fp_rows, 0:h2].set(b1c[0].astype(jnp.float32))
    packed = packed.at[fp_rows + 8, 0:h2].set(w2c[:, 0].astype(jnp.float32))
    packed = packed.at[fp_rows + 16, 0].set(b2c[0, 0].astype(jnp.float32))
    return packed, f_dim, fp_rows


def zero_output_forward(x, params, init_params, scaling=1.0, block_b=4096):
    """scaling * (mlp(x; params) - mlp(x; init_params)) via one fused Pallas kernel."""
    b, f_dim = x.shape
    packed, f_dim, fp_rows = _pack_params(params, init_params, scaling)
    rows, hp = packed.shape
    out_dim = params[2].shape[1]

    # Batch tile: large enough to amortize the ~0.35 us/step pipeline overhead,
    # capped at ~ceil(b/2) so the "parallel" grid keeps >= 2 balanced tiles for the
    # two v7x TensorCores, and always a multiple of 8 sublanes (128 when large).
    # No padding of x: the last block may be ragged; Pallas masks out-of-bounds rows.
    block_b = max(128, _round_up(block_b, 128))
    half_b = _round_up(pl.cdiv(b, 2), 8)
    tb = max(8, min(block_b, half_b, _round_up(b, 8)))
    grid = (pl.cdiv(b, tb),)

    kernel = functools.partial(_zero_output_kernel, f_dim=f_dim, fp_rows=fp_rows)

    return pl.pallas_call(
        kernel,
        out_shape=jax.ShapeDtypeStruct((b, out_dim), jnp.float32),
        grid=grid,
        in_specs=[
            pl.BlockSpec((tb, f_dim), lambda i: (i, 0)),   # x: batch-tiled, pipelined
            pl.BlockSpec((rows, hp), lambda i: (0, 0)),    # packed params: VMEM-resident
        ],
        out_specs=pl.BlockSpec((tb, out_dim), lambda i: (i, 0)),
        compiler_params=pltpu.CompilerParams(
            dimension_semantics=("parallel",),     # shard batch tiles across TCs (v7x)
            vmem_limit_bytes=32 * 1024 * 1024,     # ~12-14 MiB used at tb=4096; fits v7x
        ),
    )(x, packed)


def _make_params(key, in_features, hidden, out_features):
    """Deterministic synthetic Linear params (stored as [in, out] / [1, out])."""
    k1, k2, k3, k4 = jax.random.split(key, 4)
    w1 = jax.random.normal(k1, (in_features, hidden), jnp.float32) / jnp.sqrt(in_features)
    b1 = jax.random.normal(k2, (1, hidden), jnp.float32) * 0.1
    w2 = jax.random.normal(k3, (hidden, out_features), jnp.float32) / jnp.sqrt(hidden)
    b2 = jax.random.normal(k4, (1, out_features), jnp.float32) * 0.1
    return w1, b1, w2, b2


def _reference(x, params, init_params, scaling):
    def mlp(p):
        w1, b1, w2, b2 = p
        return jnp.tanh(x @ w1 + b1) @ w2 + b2
    return scaling * (mlp(params) - mlp(init_params))


if __name__ == "__main__":
    B, F, H, OUT = 8, 16, 32, 1
    scaling = 0.5

    key = jax.random.PRNGKey(0)
    kx, kp, kpi, kx2 = jax.random.split(key, 4)

    x = jax.random.normal(kx, (B, F), jnp.float32)
    # "module" params (as if trained) and "init_module" params (frozen copy at init).
    params = _make_params(kp, F, H, OUT)
    init_params = _make_params(kpi, F, H, OUT)

    out = jax.block_until_ready(
        zero_output_forward(x, params, init_params, scaling=scaling))
    ref = _reference(x, params, init_params, scaling)
    assert out.shape == (B, OUT)
    assert jnp.allclose(out, ref, atol=1e-5, rtol=1e-5)

    # Also exercise the multi-tile + ragged-last-block path (no wrapper-side pad).
    B2 = 300
    x2 = jax.random.normal(kx2, (B2, F), jnp.float32)
    out2 = jax.block_until_ready(
        zero_output_forward(x2, params, init_params, scaling=scaling))
    ref2 = _reference(x2, params, init_params, scaling)
    assert out2.shape == (B2, OUT)
    assert jnp.allclose(out2, ref2, atol=1e-5, rtol=1e-5)

    print("KERNEL_OK")
</pallas_src>

<mosaic_0001>
module attributes {stable_mosaic.version = 11 : i64} {
  func.func @_zero_output_kernel(%arg0: i32, %arg1: memref<8x16xf32, #tpu.memory_space<vmem>>, %arg2: memref<40x128xf32, #tpu.memory_space<vmem>>, %arg3: memref<8x1xf32, #tpu.memory_space<vmem>>) attributes {dimension_semantics = [#tpu.dimension_semantics<parallel>], iteration_bounds = array<i64: 1>, scalar_prefetch = 0 : i64, scratch_operands = 0 : i64, tpu.core_type = #tpu.core_type<tc>, window_params = [{transform_indices = @transform_0, window_bounds = array<i64: 8, 16>}, {pipeline_mode = #tpu.pipeline_mode<synchronous>, transform_indices = @transform_1, window_bounds = array<i64: 40, 128>}, {transform_indices = @transform_2, window_bounds = array<i64: 8, 1>}]} {
    %c0 = arith.constant 0 : index
    %c0_0 = arith.constant 0 : index
    %0 = vector.load %arg1[%c0, %c0_0] : memref<8x16xf32, #tpu.memory_space<vmem>>, vector<8x16xf32>
    %c0_1 = arith.constant 0 : index
    %c0_2 = arith.constant 0 : index
    %1 = vector.load %arg2[%c0_1, %c0_2] : memref<40x128xf32, #tpu.memory_space<vmem>>, vector<16x128xf32>
    %c16 = arith.constant 16 : index
    %c0_3 = arith.constant 0 : index
    %2 = vector.load %arg2[%c16, %c0_3] : memref<40x128xf32, #tpu.memory_space<vmem>>, vector<1x128xf32>
    %c24 = arith.constant 24 : index
    %c0_4 = arith.constant 0 : index
    %3 = vector.load %arg2[%c24, %c0_4] : memref<40x128xf32, #tpu.memory_space<vmem>>, vector<1x128xf32>
    %c32 = arith.constant 32 : index
    %c0_5 = arith.constant 0 : index
    %4 = vector.load %arg2[%c32, %c0_5] : memref<40x128xf32, #tpu.memory_space<vmem>>, vector<1x1xf32>
    %cst = arith.constant dense<0.000000e+00> : vector<8x128xf32>
    %5 = tpu.matmul %0, %1, %cst {dimension_numbers = #tpu.dot_dimension_numbers<[1], [0], [0], [1], [0, 0, 1, 1], [], []>} : vector<8x16xf32>, vector<16x128xf32>, vector<8x128xf32> -> vector<8x128xf32>
    %6 = vector.broadcast %2 : vector<1x128xf32> to vector<8x128xf32>
    %7 = arith.addf %5, %6 : vector<8x128xf32>
    %8 = math.tanh %7 : vector<8x128xf32>
    %9 = vector.broadcast %3 : vector<1x128xf32> to vector<8x128xf32>
    %10 = arith.mulf %8, %9 : vector<8x128xf32>
    %cst_6 = arith.constant dense<0.000000e+00> : vector<8xf32>
    %11 = vector.multi_reduction <add>, %10, %cst_6 [1] : vector<8x128xf32> to vector<8xf32>
    %12 = vector.shape_cast %11 : vector<8xf32> to vector<8x1xf32>
    %13 = vector.broadcast %4 : vector<1x1xf32> to vector<8x1xf32>
    %14 = arith.addf %12, %13 : vector<8x1xf32>
    %c0_7 = arith.constant 0 : index
    %c0_8 = arith.constant 0 : index
    %15 = vector.load %arg3[%c0_7, %c0_8] : memref<8x1xf32, #tpu.memory_space<vmem>>, vector<8x1xf32>
    tpu.vector_store %arg3[%c0_7, %c0_8], %14 {strides = array<i32>} : memref<8x1xf32, #tpu.memory_space<vmem>>, vector<8x1xf32>,
    return
  }
  func.func @transform_0(%arg0: i32) -> (i32, i32) {
    %c0_i32 = arith.constant 0 : i32
    %c0_i32_0 = arith.constant 0 : i32
    return %arg0, %c0_i32 : i32, i32
  }
  func.func @transform_1(%arg0: i32) -> (i32, i32) {
    %c0_i32 = arith.constant 0 : i32
    %c0_i32_0 = arith.constant 0 : i32
    %c0_i32_1 = arith.constant 0 : i32
    return %c0_i32, %c0_i32_0 : i32, i32
  }
  func.func @transform_2(%arg0: i32) -> (i32, i32) {
    %c0_i32 = arith.constant 0 : i32
    %c0_i32_0 = arith.constant 0 : i32
    return %arg0, %c0_i32 : i32, i32
  }
}

</mosaic_0001>

<bundles_post_ra>
// kernel: tpu_custom_call.1
= control target key start
LH: loop header
LB: loop body
LE: loop exit
PB: predicated region body
PF: predicated region fallthrough
CT: control target
= control target key end

     0   :  { %7 = vsyncpa [#allocation3], 0  ;;  %s272_s0 = inlined_call_operand.hbm [shape: f32[8,16], index: 0, kind: input, shape index: {}]   ;;  %s273_s1 = inlined_call_operand.hbm [shape: f32[40,128], index: 1, kind: input, shape index: {}]   ;;  %s274_s2 = inlined_call_operand.vmem [shape: f32[8,1], index: 2, kind: output, shape index: {}]  }
   0x1   :  { %8 = vsyncpa [#allocation5], 0  ;;  %s216_s9 = smov [#allocation2]   ;;  %s217_s11 = smov [#allocation4]  }
   0x2   :  { %s15_s10 = sshll.u32 %s216_s9, 4  ;;  %s24_s12 = sshll.u32 %s217_s11, 4  ;;  %s16_s10 = int_to_ptr.vmem [resolvable:$true] %s15_s10  ;;  %s238_s12 = int_to_ptr.vmem [resolvable:$true] %s24_s12 }
   0x3   :  { %s168_s15 = scalar_lea.hbm %s272_s0, 128 }
   0x4   :  { %p169_p0 = scmp.ne.s32.totalorder %s272_s0, %s168_s15  ;;  %p172_p1 = scmp.lt.u32.totalorder %s168_s15, %s272_s0 }
   0x6   :  { %p174_p2 = pnand %p172_p1, %p169_p0 }
   0x8   :  { %177 = shalt.err (!%p174_p2)
}
   0x9   :  { %s178_s20 = scalar_lea.vmem %s16_s10, 128  ;;  %p183_p4 = scmp.lt.s32.totalorder %s16_s10, %s16_s10 }
   0xa   :  { %p179_p3 = scmp.ne.s32.totalorder %s16_s10, %s178_s20  ;;  %p184_p5 = scmp.lt.s32.totalorder %s178_s20, %s178_s20 }
   0xc   :  { %p185_p6 = por %p184_p5, %p183_p4 }
   0xe   :  { %p186_p7 = pnand %p185_p6, %p179_p3 }
  0x10   :  { %189 = shalt.err (!%p186_p7)
}
  0x11   :  { %18 = dma.hbm_to_vmem [thread:$0]  %s272_s0, 128, %s16_s10, [#allocation3]  }
  0x12   :  { %s190_s25 = scalar_lea.hbm %s273_s1, 640 }
  0x13   :  { %p191_p8 = scmp.ne.s32.totalorder %s273_s1, %s190_s25  ;;  %p194_p9 = scmp.lt.u32.totalorder %s190_s25, %s273_s1 }
  0x15   :  { %p196_p10 = pnand %p194_p9, %p191_p8 }
  0x17   :  { %199 = shalt.err (!%p196_p10)
}
  0x18   :  { %s200_s30 = scalar_lea.vmem %s238_s12, 640  ;;  %p205_p12 = scmp.lt.s32.totalorder %s238_s12, %s238_s12 }
  0x19   :  { %p201_p11 = scmp.ne.s32.totalorder %s238_s12, %s200_s30  ;;  %p206_p13 = scmp.lt.s32.totalorder %s200_s30, %s200_s30 }
  0x1b   :  { %p207_p0 = por %p206_p13, %p205_p12 }
  0x1d   :  { %p208_p1 = pnand %p207_p0, %p201_p11 }
  0x1f   :  { %211 = shalt.err (!%p208_p1)
}
  0x20   :  { %s218_s0 = smov 128   ;;  %s219_s3 = smov 8  }
  0x21   :  { %30 = dma.hbm_to_vmem [thread:$0]  %s273_s1, 640, %s238_s12, [#allocation5], %s218_s0, %s218_s0, %s219_s3  }
  0x22   :  { %212 = dma.done.wait [#allocation3], 128  }
  0x23   :  { %213 = vsyncadd [#allocation3], 4294967168 }
  0x24   :  { %214 = dma.done.wait [#allocation5], 640  }
  0x25   :  { %215 = vsyncadd [#allocation5], 4294966656  ;;  %v220_v0 = vmov 0.0|0.0   ;;  %vm221_vm0 = vmmov 0   ;;  %v222_v1 = vmov 0.0   ;;  %v38_v2 = vld [vmem:[#allocation4] sm:$0xff] }
  0x26   :  { %156 = vmatprep.subr.bf16.mxu0 %v220_v0  ;;  %153 = vmatprep.mubr.msk.f32.mxu0 %vm221_vm0, %v222_v1  ;;  %v39_v3 = vld [vmem:[#allocation4 + $0x8] sm:$0xff]  ;;  %v37_v5 = vld [vmem:[#allocation2] sm:$0xff]  ;;  %vm47_vm1 = vcmask 130048   ;;  %v142_v6 = vld [vmem:[#allocation4 + $0x10] ss:$0 sm:$0xff]  ;;  %vm134_vm2 = vcmask 7168  }
  0x27   :  { %v157_v4 = vpack.c.bf16 %v39_v3, %v38_v2  ;;  %v144_v10 = vld [vmem:[#allocation4 + $0x18] ss:$0 sm:$0xff]  ;;  %v145_v13 = vld [vmem:[#allocation4 + $0x20] ss:$0 sm:$0xff] }
  0x29   :  { %158 = vmatpush3.bf16.msra.mxu0 %v157_v4 }
  0x2c   :  { %154 = vmatmul.mubr.msk.f32.vlgmr.msra.gmra.mrb[0].mxu0 %vm47_vm1, %v37_v5 }
  0xff   :  { %v117_v7 = vpop.f32.mrb[0].mxu0 }
 0x100   :  { %v118_v8 = vadd.f32 %v142_v6, %v117_v7  ;;  %v155_v9 = vpop.f32.mrb[1].mxu0 }
 0x102   :  { %166 = vtanh.f32 %v118_v8 }
 0x10c   :  { %v167_v11 = vpop.eup %166 }
 0x10d   :  { %v126_v12 = vmul.f32 %v167_v11, %v144_v10 }
 0x10f   :  { %127 = vadd.xlane.f32.xlu0 %v126_v12 }
 0x19c   :  { %v128_v14 = vpop.xlane.xlu0 %127 }
 0x19d   :  { %v133_v15 = vadd.f32 %v145_v13, %v128_v14 }
 0x19f   :  { %135 = vst.msk [vmem:[%s274_s2] sm:$0xff] %vm134_vm2, %v133_v15 }
 0x1a0   :  { %140 = vsyncpa [#allocation3], 1 }
 0x1a1   :  { %141 = vsyncpa [#allocation5], 1 }

</bundles_post_ra>
